<compile_context>
chip_gen: v7x
topology: tpu7x:2x2x1
jax: 0.10.0
libtpu: 0.0.40
codegen_flags: <defaults>
</compile_context>

<pallas_src>
import functools

import jax
import jax.numpy as jnp
from jax.experimental import pallas as pl
from jax.experimental.pallas import tpu as pltpu

_LANE = 128      # lane width (last dim granularity)
_SUBLANE = 8     # sublane granularity (second-to-last dim)


def _round_up(n: int, m: int) -> int:
    return ((n + m - 1) // m) * m


def _sigmoid_f32(v):
    # EUP-friendly sigmoid: tanh lands in the (otherwise idle) EUP slot,
    # keeping VALU slack free for bias adds / casts on large batch tiles.
    return 0.5 * (jnp.tanh(0.5 * v) + 1.0)


def ffnn_kernel(x_ref, w1t_ref, b1_ref, w2t_ref, b2_ref, o_ref, *, out_size):
    """Fused 2-layer MLP with sigmoid activations on one batch tile.

    x_ref:   (TB, I)   input tile
    w1t_ref: (I,  Hp)  layer-1 weight, pre-transposed, hidden padded to 128
    b1_ref:  (1,  Hp)  layer-1 bias (padded cols are 0), f32
    w2t_ref: (Hp, Op)  layer-2 weight, pre-transposed; rows >= H are zero
    b2_ref:  (1,  Op)  layer-2 bias (padded cols are 0), f32
    o_ref:   (TB, out_size)  unpadded output tile
    """
    # Cast x to the weight dtype so a bf16 param path uses the native bf16
    # MXU (f32 x * bf16 w would silently promote to the slow f32 path).
    x = x_ref[...].astype(w1t_ref.dtype)

    # Layer 1: (TB, I) @ (I, Hp) with f32 accumulation on the MXU.
    h = jnp.dot(x, w1t_ref[...], preferred_element_type=jnp.float32)
    h = _sigmoid_f32(h + b1_ref[...])
    # Padded hidden lanes are sigmoid(0) = 0.5, but the matching rows of W2^T
    # are zero, so they contribute nothing to layer 2.
    h = h.astype(w2t_ref.dtype)

    # Layer 2: (TB, Hp) @ (Hp, Op) with f32 accumulation.
    y = jnp.dot(h, w2t_ref[...], preferred_element_type=jnp.float32)
    y = _sigmoid_f32(y + b2_ref[...])

    # Store only the real output columns; avoids a separate post-kernel slice
    # (an extra HBM pass) and cuts output writeback by Op/out_size.
    o_ref[...] = y[:, :out_size].astype(o_ref.dtype)


def prepare_ffnn_params(w1, b1, w2, b2, param_dtype=jnp.float32):
    """One-time parameter prep (hoisted out of the per-call hot path).

    w1: (hidden, input)  b1: (hidden,)   -- PyTorch nn.Linear convention
    w2: (output, hidden) b2: (output,)

    Returns ((w1t, b1r, w2t, b2r), output_size): weights pre-transposed to
    (in, out), feature dims zero-padded to multiples of 128, padded-hidden
    rows of w2t zeroed (so padding cannot leak into the result).
    """
    hidden, inp = w1.shape
    out, _ = w2.shape
    hp = _round_up(hidden, _LANE)
    op = _round_up(out, _LANE)

    w1t = jnp.zeros((inp, hp), param_dtype).at[:, :hidden].set(
        w1.T.astype(param_dtype))
    b1r = jnp.zeros((1, hp), jnp.float32).at[:, :hidden].set(
        b1.astype(jnp.float32))
    w2t = jnp.zeros((hp, op), param_dtype).at[:hidden, :out].set(
        w2.T.astype(param_dtype))
    b2r = jnp.zeros((1, op), jnp.float32).at[:, :out].set(
        b2.astype(jnp.float32))
    return (w1t, b1r, w2t, b2r), out


def ffnn_forward_prepared(x, params, output_size, *, batch_tile=2048):
    """x: (B, input). params from prepare_ffnn_params. Returns (B, output)."""
    w1t, b1r, w2t, b2r = params
    B, I = x.shape
    Hp = w1t.shape[1]
    Op = w2t.shape[1]

    # Batch tile: big tiles amortize per-grid-step overhead; for small B,
    # split into >=2 sublane-aligned tiles so both v7x TensorCores get work.
    if B > batch_tile:
        tb = batch_tile
    else:
        tb = max(_SUBLANE, _round_up(pl.cdiv(B, 2), _SUBLANE))
        tb = min(tb, _round_up(B, _SUBLANE))
    grid = (pl.cdiv(B, tb),)

    # Scoped-VMEM budget: double-buffered x/out tiles, single-buffered
    # weights, f32 intermediates; 2x headroom, clamped to [32 MiB, 64 MiB].
    w_bytes = jnp.dtype(w1t.dtype).itemsize
    x_bytes = jnp.dtype(x.dtype).itemsize
    vmem_est = (
        2 * tb * I * x_bytes                     # x tile (double-buffered)
        + 2 * tb * output_size * x_bytes         # out tile (double-buffered)
        + (I * Hp + Hp * Op) * w_bytes           # weights (single-buffered)
        + (Hp + Op) * 4                          # biases
        + tb * (Hp + Op) * 4                     # f32 intermediates h / y
    )
    vmem_limit = int(min(64 << 20, max(32 << 20, 2 * vmem_est)))

    kernel = functools.partial(ffnn_kernel, out_size=output_size)
    keep = lambda i: (0, 0)   # grid-invariant weights/biases stay resident

    out = pl.pallas_call(
        kernel,
        out_shape=jax.ShapeDtypeStruct((B, output_size), x.dtype),
        grid_spec=pltpu.PrefetchScalarGridSpec(
            num_scalar_prefetch=0,
            grid=grid,
            in_specs=[
                pl.BlockSpec((tb, I), lambda i: (i, 0)),     # x: tiled over batch
                pl.BlockSpec((I, Hp), keep, pipeline_mode=pl.Buffered(1)),
                pl.BlockSpec((1, Hp), keep, pipeline_mode=pl.Buffered(1)),
                pl.BlockSpec((Hp, Op), keep, pipeline_mode=pl.Buffered(1)),
                pl.BlockSpec((1, Op), keep, pipeline_mode=pl.Buffered(1)),
            ],
            out_specs=pl.BlockSpec((tb, output_size), lambda i: (i, 0)),
        ),
        compiler_params=pltpu.CompilerParams(
            dimension_semantics=("parallel",),   # batch tiles are independent
            vmem_limit_bytes=vmem_limit,
        ),
    )(x, w1t, b1r, w2t, b2r)
    return out


def ffnn_forward(x, w1, b1, w2, b2, *, param_dtype=jnp.float32,
                 batch_tile=2048):
    """Convenience wrapper matching the original (un-prepared) signature."""
    params, out = prepare_ffnn_params(w1, b1, w2, b2, param_dtype=param_dtype)
    return ffnn_forward_prepared(x, params, out, batch_tile=batch_tile)


def xavier_normal(key, out_features, in_features):
    # matches nn.init.xavier_normal_: std = sqrt(2 / (fan_in + fan_out))
    std = (2.0 / (in_features + out_features)) ** 0.5
    return std * jax.random.normal(key, (out_features, in_features), jnp.float32)


def linear_bias_init(key, out_features, in_features):
    # matches PyTorch default nn.Linear bias init: U(-1/sqrt(fan_in), 1/sqrt(fan_in))
    bound = 1.0 / (in_features ** 0.5)
    return jax.random.uniform(key, (out_features,), jnp.float32, -bound, bound)


if __name__ == "__main__":
    input_size, hidden_size, output_size = 32, 64, 16
    batch = 8

    key = jax.random.PRNGKey(0)
    k_x, k_w1, k_b1, k_w2, k_b2 = jax.random.split(key, 5)

    x = jax.random.normal(k_x, (batch, input_size), jnp.float32)
    w1 = xavier_normal(k_w1, hidden_size, input_size)
    b1 = linear_bias_init(k_b1, hidden_size, input_size)
    w2 = xavier_normal(k_w2, output_size, hidden_size)
    b2 = linear_bias_init(k_b2, output_size, hidden_size)

    # Prep (transpose + pad) once; only the pallas_call is on the hot path.
    params, out_features = prepare_ffnn_params(w1, b1, w2, b2)
    fwd = jax.jit(functools.partial(
        ffnn_forward_prepared, params=params, output_size=out_features))

    out = fwd(x)
    jax.block_until_ready(out)

    # Reference check in plain JAX (f32 path -> tight tolerance).
    h_ref = jax.nn.sigmoid(x @ w1.T + b1)
    y_ref = jax.nn.sigmoid(h_ref @ w2.T + b2)
    assert out.shape == (batch, output_size)
    assert jnp.allclose(out, y_ref, atol=1e-5, rtol=1e-5)

    print("KERNEL_OK")
</pallas_src>

<mosaic_0001>
module attributes {stable_mosaic.version = 11 : i64} {
  func.func @ffnn_kernel(%arg0: i32, %arg1: memref<8x32xf32, #tpu.memory_space<vmem>>, %arg2: memref<32x128xf32, #tpu.memory_space<vmem>>, %arg3: memref<1x128xf32, #tpu.memory_space<vmem>>, %arg4: memref<128x128xf32, #tpu.memory_space<vmem>>, %arg5: memref<1x128xf32, #tpu.memory_space<vmem>>, %arg6: memref<8x16xf32, #tpu.memory_space<vmem>>) attributes {dimension_semantics = [#tpu.dimension_semantics<parallel>], iteration_bounds = array<i64: 1>, scalar_prefetch = 0 : i64, scratch_operands = 0 : i64, tpu.core_type = #tpu.core_type<tc>, window_params = [{transform_indices = @transform_0, window_bounds = array<i64: 8, 32>}, {pipeline_mode = #tpu.pipeline_mode<synchronous>, transform_indices = @transform_1, window_bounds = array<i64: 32, 128>}, {pipeline_mode = #tpu.pipeline_mode<synchronous>, transform_indices = @transform_2, window_bounds = array<i64: 1, 128>}, {pipeline_mode = #tpu.pipeline_mode<synchronous>, transform_indices = @transform_3, window_bounds = array<i64: 128, 128>}, {pipeline_mode = #tpu.pipeline_mode<synchronous>, transform_indices = @transform_4, window_bounds = array<i64: 1, 128>}, {transform_indices = @transform_5, window_bounds = array<i64: 8, 16>}]} {
    %c0 = arith.constant 0 : index
    %c0_0 = arith.constant 0 : index
    %0 = vector.load %arg1[%c0, %c0_0] : memref<8x32xf32, #tpu.memory_space<vmem>>, vector<8x32xf32>
    %c0_1 = arith.constant 0 : index
    %c0_2 = arith.constant 0 : index
    %1 = vector.load %arg2[%c0_1, %c0_2] : memref<32x128xf32, #tpu.memory_space<vmem>>, vector<32x128xf32>
    %cst = arith.constant dense<0.000000e+00> : vector<8x128xf32>
    %2 = tpu.matmul %0, %1, %cst {dimension_numbers = #tpu.dot_dimension_numbers<[1], [0], [0], [1], [0, 0, 1, 1], [], []>} : vector<8x32xf32>, vector<32x128xf32>, vector<8x128xf32> -> vector<8x128xf32>
    %c0_3 = arith.constant 0 : index
    %c0_4 = arith.constant 0 : index
    %3 = vector.load %arg3[%c0_3, %c0_4] : memref<1x128xf32, #tpu.memory_space<vmem>>, vector<1x128xf32>
    %4 = vector.broadcast %3 : vector<1x128xf32> to vector<8x128xf32>
    %5 = arith.addf %2, %4 : vector<8x128xf32>
    %cst_5 = arith.constant 5.000000e-01 : f32
    %6 = vector.broadcast %cst_5 : f32 to vector<8x128xf32>
    %7 = arith.mulf %6, %5 : vector<8x128xf32>
    %8 = math.tanh %7 : vector<8x128xf32>
    %cst_6 = arith.constant 1.000000e+00 : f32
    %9 = vector.broadcast %cst_6 : f32 to vector<8x128xf32>
    %10 = arith.addf %8, %9 : vector<8x128xf32>
    %cst_7 = arith.constant 5.000000e-01 : f32
    %11 = vector.broadcast %cst_7 : f32 to vector<8x128xf32>
    %12 = arith.mulf %11, %10 : vector<8x128xf32>
    %c0_8 = arith.constant 0 : index
    %c0_9 = arith.constant 0 : index
    %13 = vector.load %arg4[%c0_8, %c0_9] : memref<128x128xf32, #tpu.memory_space<vmem>>, vector<128x128xf32>
    %cst_10 = arith.constant dense<0.000000e+00> : vector<8x128xf32>
    %14 = tpu.matmul %12, %13, %cst_10 {dimension_numbers = #tpu.dot_dimension_numbers<[1], [0], [0], [1], [0, 0, 1, 1], [], []>} : vector<8x128xf32>, vector<128x128xf32>, vector<8x128xf32> -> vector<8x128xf32>
    %c0_11 = arith.constant 0 : index
    %c0_12 = arith.constant 0 : index
    %15 = vector.load %arg5[%c0_11, %c0_12] : memref<1x128xf32, #tpu.memory_space<vmem>>, vector<1x128xf32>
    %16 = vector.broadcast %15 : vector<1x128xf32> to vector<8x128xf32>
    %17 = arith.addf %14, %16 : vector<8x128xf32>
    %cst_13 = arith.constant 5.000000e-01 : f32
    %18 = vector.broadcast %cst_13 : f32 to vector<8x128xf32>
    %19 = arith.mulf %18, %17 : vector<8x128xf32>
    %20 = math.tanh %19 : vector<8x128xf32>
    %cst_14 = arith.constant 1.000000e+00 : f32
    %21 = vector.broadcast %cst_14 : f32 to vector<8x128xf32>
    %22 = arith.addf %20, %21 : vector<8x128xf32>
    %cst_15 = arith.constant 5.000000e-01 : f32
    %23 = vector.broadcast %cst_15 : f32 to vector<8x128xf32>
    %24 = arith.mulf %23, %22 : vector<8x128xf32>
    %25 = vector.extract_strided_slice %24 {offsets = [0, 0], sizes = [8, 16], strides = [1, 1]} : vector<8x128xf32> to vector<8x16xf32>
    %c0_16 = arith.constant 0 : index
    %c0_17 = arith.constant 0 : index
    %26 = vector.load %arg6[%c0_16, %c0_17] : memref<8x16xf32, #tpu.memory_space<vmem>>, vector<8x16xf32>
    tpu.vector_store %arg6[%c0_16, %c0_17], %25 {strides = array<i32>} : memref<8x16xf32, #tpu.memory_space<vmem>>, vector<8x16xf32>,
    return
  }
  func.func @transform_0(%arg0: i32) -> (i32, i32) {
    %c0_i32 = arith.constant 0 : i32
    %c0_i32_0 = arith.constant 0 : i32
    return %arg0, %c0_i32 : i32, i32
  }
  func.func @transform_1(%arg0: i32) -> (i32, i32) {
    %c0_i32 = arith.constant 0 : i32
    %c0_i32_0 = arith.constant 0 : i32
    %c0_i32_1 = arith.constant 0 : i32
    return %c0_i32, %c0_i32_0 : i32, i32
  }
  func.func @transform_2(%arg0: i32) -> (i32, i32) {
    %c0_i32 = arith.constant 0 : i32
    %c0_i32_0 = arith.constant 0 : i32
    %c0_i32_1 = arith.constant 0 : i32
    return %c0_i32, %c0_i32_0 : i32, i32
  }
  func.func @transform_3(%arg0: i32) -> (i32, i32) {
    %c0_i32 = arith.constant 0 : i32
    %c0_i32_0 = arith.constant 0 : i32
    %c0_i32_1 = arith.constant 0 : i32
    return %c0_i32, %c0_i32_0 : i32, i32
  }
  func.func @transform_4(%arg0: i32) -> (i32, i32) {
    %c0_i32 = arith.constant 0 : i32
    %c0_i32_0 = arith.constant 0 : i32
    %c0_i32_1 = arith.constant 0 : i32
    return %c0_i32, %c0_i32_0 : i32, i32
  }
  func.func @transform_5(%arg0: i32) -> (i32, i32) {
    %c0_i32 = arith.constant 0 : i32
    %c0_i32_0 = arith.constant 0 : i32
    return %arg0, %c0_i32 : i32, i32
  }
}

</mosaic_0001>

<bundles_post_ra>
// kernel: ffnn_forward_prepared.1
= control target key start
LH: loop header
LB: loop body
LE: loop exit
PB: predicated region body
PF: predicated region fallthrough
CT: control target
= control target key end

     0   :  { %10 = vsyncpa [#allocation3], 0  ;;  %s572_s0 = inlined_call_operand.hbm [shape: f32[8,32], index: 0, kind: input, shape index: {}]   ;;  %s573_s1 = inlined_call_operand.hbm [shape: f32[32,128], index: 1, kind: input, shape index: {}]   ;;  %s574_s2 = inlined_call_operand.vmem [shape: f32[1,128], index: 2, kind: input, shape index: {}]   ;;  %s575_s3 = inlined_call_operand.hbm [shape: f32[128,128], index: 3, kind: input, shape index: {}]   ;;  %s576_s4 = inlined_call_operand.vmem [shape: f32[1,128], index: 4, kind: input, shape index: {}]   ;;  %s577_s5 = inlined_call_operand.hbm [shape: f32[8,16], index: 5, kind: output, shape index: {}]  }
   0x1   :  { %11 = vsyncpa [#allocation6], 0 }
   0x2   :  { %12 = vsyncpa [#allocation4], 0  ;;  %s473_s18 = smov [#allocation5]   ;;  %s379_s22 = scalar_lea.hbm %s573_s1, 512 }
   0x3   :  { %s28_s19 = sshll.u32 %s473_s18, 4  ;;  %p380_p0 = scmp.ne.s32.totalorder %s573_s1, %s379_s22  ;;  %s29_s19 = int_to_ptr.vmem [resolvable:$true] %s28_s19 }
   0x4   :  { %p383_p1 = scmp.lt.u32.totalorder %s379_s22, %s573_s1 }
   0x6   :  { %p385_p2 = pnand %p383_p1, %p380_p0 }
   0x8   :  { %388 = shalt.err (!%p385_p2)
}
   0x9   :  { %s389_s27 = scalar_lea.vmem %s29_s19, 512  ;;  %p394_p4 = scmp.lt.s32.totalorder %s29_s19, %s29_s19 }
   0xa   :  { %p390_p3 = scmp.ne.s32.totalorder %s29_s19, %s389_s27  ;;  %p395_p5 = scmp.lt.s32.totalorder %s389_s27, %s389_s27 }
   0xc   :  { %p396_p6 = por %p395_p5, %p394_p4 }
   0xe   :  { %p397_p7 = pnand %p396_p6, %p390_p3 }
  0x10   :  { %400 = shalt.err (!%p397_p7)
}
  0x11   :  { %s474_s28 = smov 128   ;;  %s475_s29 = smov 8  }
  0x12   :  { %34 = dma.hbm_to_vmem [thread:$0]  %s573_s1, 512, %s29_s19, [#allocation6], %s474_s28, %s474_s28, %s475_s29  }
  0x13   :  { %s476_s7 = smov [#allocation2]   ;;  %s477_s9 = smov [#allocation7]  }
  0x14   :  { %s19_s8 = sshll.u32 %s476_s7, 4  ;;  %s42_s10 = sshll.u32 %s477_s9, 4  ;;  %s20_s8 = int_to_ptr.vmem [resolvable:$true] %s19_s8  ;;  %s43_s10 = int_to_ptr.vmem [resolvable:$true] %s42_s10 }
  0x15   :  { %s401_s13 = scalar_lea.hbm %s572_s0, 128 }
  0x16   :  { %p402_p8 = scmp.ne.s32.totalorder %s572_s0, %s401_s13  ;;  %p405_p9 = scmp.lt.u32.totalorder %s401_s13, %s572_s0 }
  0x18   :  { %p407_p10 = pnand %p405_p9, %p402_p8 }
  0x1a   :  { %410 = shalt.err (!%p407_p10)
}
  0x1b   :  { %s411_s1 = scalar_lea.vmem %s20_s8, 128  ;;  %p416_p12 = scmp.lt.s32.totalorder %s20_s8, %s20_s8 }
  0x1c   :  { %p412_p11 = scmp.ne.s32.totalorder %s20_s8, %s411_s1  ;;  %p417_p13 = scmp.lt.s32.totalorder %s411_s1, %s411_s1 }
  0x1e   :  { %p418_p0 = por %p417_p13, %p416_p12 }
  0x20   :  { %p419_p1 = pnand %p418_p0, %p412_p11 }
  0x22   :  { %422 = shalt.err (!%p419_p1)
}
  0x23   :  { %22 = dma.hbm_to_vmem [thread:$0]  %s572_s0, 128, %s20_s8, [#allocation3]  }
  0x24   :  { %s423_s22 = scalar_lea.hbm %s575_s3, 2048 }
  0x25   :  { %p424_p2 = scmp.ne.s32.totalorder %s575_s3, %s423_s22  ;;  %p427_p3 = scmp.lt.u32.totalorder %s423_s22, %s575_s3 }
  0x27   :  { %p429_p4 = pnand %p427_p3, %p424_p2 }
  0x29   :  { %432 = shalt.err (!%p429_p4)
}
  0x2a   :  { %s433_s27 = scalar_lea.vmem %s43_s10, 2048  ;;  %p438_p6 = scmp.lt.s32.totalorder %s43_s10, %s43_s10 }
  0x2b   :  { %p434_p5 = scmp.ne.s32.totalorder %s43_s10, %s433_s27  ;;  %p439_p7 = scmp.lt.s32.totalorder %s433_s27, %s433_s27 }
  0x2d   :  { %p440_p8 = por %p439_p7, %p438_p6 }
  0x2f   :  { %p441_p9 = pnand %p440_p8, %p434_p5 }
  0x31   :  { %444 = shalt.err (!%p441_p9)
}
  0x32   :  { %48 = dma.hbm_to_vmem [thread:$0]  %s575_s3, 2048, %s43_s10, [#allocation6], %s474_s28, %s474_s28, %s475_s29  }
  0x33   :  { %467 = dma.done.wait [#allocation3], 128  }
  0x34   :  { %468 = vsyncadd [#allocation3], 4294967168 }
  0x35   :  { %469 = dma.done.wait [#allocation6], 2560  }
  0x36   :  { %470 = vsyncadd [#allocation6], 4294964736  ;;  %v478_v0 = vmov 0.0|0.0   ;;  %vm479_vm0 = vmmov 0   ;;  %v480_v1 = vmov 0.0   ;;  %v61_v2 = vld [vmem:[#allocation5] sm:$0xff] }
  0x37   :  { %336 = vmatprep.subr.bf16.mxu0 %v478_v0  ;;  %298 = vmatprep.mubr.msk.f32.mxu0 %vm479_vm0, %v480_v1  ;;  %v62_v3 = vld [vmem:[#allocation5 + $0x8] sm:$0xff]  ;;  %v63_v4 = vld [vmem:[#allocation5 + $0x10] sm:$0xff]  ;;  %v64_v6 = vld [vmem:[#allocation5 + $0x18] sm:$0xff]  ;;  %vm72_vm1 = vcmask 261120   ;;  %vm247_vm2 = vcmask 130048  }
  0x38   :  { %342 = vmatprep.subr.bf16.mxu1 %v478_v0  ;;  %333 = vmatprep.mubr.msk.f32.mxu1 %vm479_vm0, %v480_v1  ;;  %v337_v5 = vpack.c.bf16 %v62_v3, %v61_v2  ;;  %v150_v7 = vld [vmem:[#allocation7] sm:$0xff]  ;;  %v151_v8 = vld [vmem:[#allocation7 + $0x8] sm:$0xff]  ;;  %v152_v9 = vld [vmem:[#allocation7 + $0x10] sm:$0xff]  ;;  %v340_v11 = vpack.c.bf16 %v64_v6, %v63_v4 }
  0x39   :  { %v153_v10 = vld [vmem:[#allocation7 + $0x18] sm:$0xff]  ;;  %v343_v12 = vpack.c.bf16 %v151_v8, %v150_v7  ;;  %v154_v14 = vld [vmem:[#allocation7 + $0x20] sm:$0xff]  ;;  %v155_v15 = vld [vmem:[#allocation7 + $0x28] sm:$0xff] }
  0x3a   :  { %338 = vmatpush3.bf16.msra.mxu0 %v337_v5  ;;  %v346_v13 = vpack.c.bf16 %v153_v10, %v152_v9  ;;  %v60_v16 = vld [vmem:[#allocation2] sm:$0xff]  ;;  %v349_v17 = vpack.c.bf16 %v155_v15, %v154_v14  ;;  %v156_v18 = vld [vmem:[#allocation7 + $0x30] sm:$0xff]  ;;  %v158_v21 = vld [vmem:[#allocation7 + $0x40] sm:$0xff] }
  0x3b   :  { %339 = vmatprep.subr.bf16.mxu0 %v478_v0  ;;  %344 = vmatpush3.bf16.msra.mxu1 %v343_v12  ;;  %v157_v19 = vld [vmem:[#allocation7 + $0x38] sm:$0xff]  ;;  %v159_v22 = vld [vmem:[#allocation7 + $0x48] sm:$0xff]  ;;  %v160_v24 = vld [vmem:[#allocation7 + $0x50] sm:$0xff] }
  0x3c   :  { %345 = vmatprep.subr.bf16.mxu1 %v478_v0  ;;  %v352_v20 = vpack.c.bf16 %v157_v19, %v156_v18  ;;  %v355_v23 = vpack.c.bf16 %v159_v22, %v158_v21  ;;  %v161_v25 = vld [vmem:[#allocation7 + $0x58] sm:$0xff]  ;;  %v162_v27 = vld [vmem:[#allocation7 + $0x60] sm:$0xff]  ;;  %v163_v28 = vld [vmem:[#allocation7 + $0x68] sm:$0xff] }
  0x3d   :  { %v358_v26 = vpack.c.bf16 %v161_v25, %v160_v24  ;;  %v361_v29 = vpack.c.bf16 %v163_v28, %v162_v27  ;;  %v164_v30 = vld [vmem:[#allocation7 + $0x70] sm:$0xff]  ;;  %v165_v31 = vld [vmem:[#allocation7 + $0x78] sm:$0xff] }
  0x3e   :  { %341 = vmatpush3.bf16.msra.mxu0 %v340_v11  ;;  %v364_v32 = vpack.c.bf16 %v165_v31, %v164_v30  ;;  %v265_v33 = vld [vmem:[%s574_s2] ss:$0 sm:$0xff]  ;;  %s481_s2 = smov [#allocation8]  }
  0x3f   :  { %347 = vmatpush3.bf16.msra.mxu1 %v346_v13  ;;  %v267_v41 = vld [vmem:[%s576_s4] ss:$0 sm:$0xff]  ;;  %s255_s7 = sshll.u32 %s481_s2, 4  ;;  %s256_s7 = int_to_ptr.vmem [resolvable:$true] %s255_s7 }
  0x40   :  { %348 = vmatprep.subr.bf16.mxu1 %v478_v0  ;;  %s445_s8 = scalar_lea.vmem %s256_s7, 128  ;;  %p450_p11 = scmp.lt.s32.totalorder %s256_s7, %s256_s7 }
  0x41   :  { %299 = vmatmul.mubr.msk.f32.vlgmr.msra.gmra.mrb[0].mxu0 %vm72_vm1, %v60_v16  ;;  %p446_p10 = scmp.ne.s32.totalorder %s256_s7, %s445_s8  ;;  %p451_p12 = scmp.lt.s32.totalorder %s445_s8, %s445_s8 }
  0x43   :  { %350 = vmatpush3.bf16.msra.mxu1 %v349_v17  ;;  %p452_p13 = por %p451_p12, %p450_p11 }
  0x44   :  { %351 = vmatprep.subr.bf16.mxu1 %v478_v0 }
  0x45   :  { %p453_p0 = pnand %p452_p13, %p446_p10 }
  0x47   :  { %353 = vmatpush3.bf16.msra.mxu1 %v352_v20 }
  0x48   :  { %354 = vmatprep.subr.bf16.mxu1 %v478_v0 }
  0x4b   :  { %356 = vmatpush3.bf16.msra.mxu1 %v355_v23 }
  0x4c   :  { %357 = vmatprep.subr.bf16.mxu1 %v478_v0 }
  0x4f   :  { %359 = vmatpush3.bf16.msra.mxu1 %v358_v26 }
  0x50   :  { %360 = vmatprep.subr.bf16.mxu1 %v478_v0 }
  0x53   :  { %362 = vmatpush3.bf16.msra.mxu1 %v361_v29 }
  0x54   :  { %363 = vmatprep.subr.bf16.mxu1 %v478_v0 }
  0x57   :  { %365 = vmatpush3.bf16.msra.mxu1 %v364_v32 }
 0x114   :  { %v142_v34 = vpop.f32.mrb[0].mxu0 }
 0x115   :  { %v143_v35 = vadd.f32 %v265_v33, %v142_v34  ;;  %v300_v36 = vpop.f32.mrb[1].mxu0 }
 0x117   :  { %v146_v37 = vmul.f32 0.5, %v143_v35 }
 0x119   :  { %375 = vtanh.f32 %v146_v37 }
 0x123   :  { %v376_v38 = vpop.eup %375 }
 0x124   :  { %v148_v39 = vadd.f32 1.0, %v376_v38 }
 0x126   :  { %v149_v40 = vmul.f32 0.5, %v148_v39 }
 0x128   :  { %334 = vmatmul.mubr.f32.vlgmr.msra.gmra.mrb[0].mxu1 %v149_v40 }
 0x1fb   :  { %v239_v42 = vpop.f32.mrb[0].mxu1 }
 0x1fc   :  { %v240_v43 = vadd.f32 %v267_v41, %v239_v42  ;;  %v335_v44 = vpop.f32.mrb[1].mxu1 }
 0x1fe   :  { %v243_v45 = vmul.f32 0.5, %v240_v43 }
 0x200   :  { %377 = vtanh.f32 %v243_v45 }
 0x20a   :  { %v378_v46 = vpop.eup %377 }
 0x20b   :  { %v245_v47 = vadd.f32 1.0, %v378_v46 }
 0x20d   :  { %v246_v48 = vmul.f32 0.5, %v245_v47 }
 0x20f   :  { %248 = vst.msk [vmem:[#allocation8] sm:$0xff] %vm247_vm2, %v246_v48 }
 0x210   :  { %456 = shalt.err (!%p453_p0)
}
 0x211   :  { %s457_s10 = scalar_lea.hbm %s577_s5, 128 }
 0x212   :  { %p458_p1 = scmp.ne.s32.totalorder %s577_s5, %s457_s10  ;;  %p461_p2 = scmp.lt.u32.totalorder %s457_s10, %s577_s5 }
 0x214   :  { %p463_p3 = pnand %p461_p2, %p458_p1 }
 0x216   :  { %466 = shalt.err (!%p463_p3)
}
 0x217   :  { %258 = dma.vmem_to_hbm [thread:$0]  %s256_s7, 128, %s577_s5, [#allocation4]  }
 0x218   :  { %471 = dma.done.wait [#allocation4], 128  }
 0x219   :  { %472 = vsyncadd [#allocation4], 4294967168 }
 0x21a   :  { %262 = vsyncpa [#allocation3], 1 }
 0x21b   :  { %263 = vsyncpa [#allocation6], 1 }
 0x21c   :  { %264 = vsyncpa [#allocation4], 1 }

</bundles_post_ra>
